<compile_context>
chip_gen: v6e
topology: v6e:2x2x1
jax: 0.10.0
libtpu: 0.0.40
codegen_flags: <defaults>
</compile_context>

<pallas_src>
import functools

import jax
import jax.numpy as jnp
from jax.experimental import pallas as pl
from jax.experimental.pallas import tpu as pltpu


def _round_up(v: int, m: int) -> int:
    return ((v + m - 1) // m) * m


def _mlp_kernel(x_ref, w1_ref, b1_ref, w2_ref, b2_ref, o_ref, *, apply_sigmoid):
    # x_ref:  [TB, D_in]      f32    (batch tile; cast to bf16 in-kernel)
    # w1_ref: [D_in, H_pad]   bf16   (resident)
    # b1_ref: [1, H_pad]      f32    (resident)
    # w2_ref: [H_pad, O_pad]  bf16   (resident)
    # b2_ref: [1, O_pad]      f32    (resident)
    # o_ref:  [TB, O_pad]     bf16   (lane-dense, multiple of 128 lanes)
    x = x_ref[...].astype(jnp.bfloat16)
    h = jnp.dot(x, w1_ref[...], preferred_element_type=jnp.float32)   # MXU, f32 acc
    h = jnp.maximum(h + b1_ref[...], 0.0)                             # bias + ReLU in f32
    out = jnp.dot(h.astype(jnp.bfloat16), w2_ref[...],
                  preferred_element_type=jnp.float32)                 # MXU, f32 acc
    out = out + b2_ref[...]
    if apply_sigmoid:
        # predict() post-processing for output_dim == 1; EUP slot, ~free in-kernel.
        out = jax.nn.sigmoid(out)
    o_ref[...] = out.astype(o_ref.dtype)


def prepare_params(w1, b1, w2, b2):
    """One-time parameter prep: pad hidden/output feature dims to multiples of
    128 lanes (zero pad => identity math) and cast weights to bf16. Accepts
    1-D or 2-D biases (nn.Linear biases are 1-D). Call once, reuse per forward."""
    b1 = jnp.reshape(b1, (1, -1))
    b2 = jnp.reshape(b2, (1, -1))
    d_in, hidden = w1.shape
    out_dim = w2.shape[1]
    h_pad = _round_up(hidden, 128)
    o_pad = _round_up(out_dim, 128)
    w1b = jnp.zeros((d_in, h_pad), jnp.bfloat16).at[:, :hidden].set(w1.astype(jnp.bfloat16))
    b1p = jnp.zeros((1, h_pad), jnp.float32).at[:, :hidden].set(b1.astype(jnp.float32))
    w2b = jnp.zeros((h_pad, o_pad), jnp.bfloat16).at[:hidden, :out_dim].set(w2.astype(jnp.bfloat16))
    b2p = jnp.zeros((1, o_pad), jnp.float32).at[:, :out_dim].set(b2.astype(jnp.float32))
    return w1b, b1p, w2b, b2p, out_dim


@functools.partial(jax.jit, static_argnames=("out_dim", "block_batch", "apply_sigmoid"))
def enhanced_ml_model_forward(x, w1b, b1p, w2b, b2p, out_dim, *,
                              block_batch=4096, apply_sigmoid=False):
    """logits = relu(x @ W1 + b1) @ W2 + b2 via a batch-tiled Pallas kernel.
    Weights must come from prepare_params()."""
    batch, d_in = x.shape
    h_pad = w1b.shape[1]
    o_pad = w2b.shape[1]

    # Batch tile: multiple of 8 sublanes (or the full batch when tiny), capped
    # so the grid has >= 2 steps whenever possible -> the "parallel" batch axis
    # can shard across both TensorCores on v7x.
    if batch <= 8:
        tb = batch
    else:
        half = _round_up((batch + 1) // 2, 8)
        tb = max(8, min(_round_up(block_batch, 8), half))
    grid = (pl.cdiv(batch, tb),)

    kernel = functools.partial(_mlp_kernel, apply_sigmoid=apply_sigmoid)

    out_padded = pl.pallas_call(
        kernel,
        out_shape=jax.ShapeDtypeStruct((batch, o_pad), jnp.bfloat16),
        grid_spec=pltpu.PrefetchScalarGridSpec(
            num_scalar_prefetch=0,
            grid=grid,
            in_specs=[
                pl.BlockSpec((tb, d_in), lambda i: (i, 0)),      # x: tiled over batch
                pl.BlockSpec((d_in, h_pad), lambda i: (0, 0)),   # W1: resident
                pl.BlockSpec((1, h_pad), lambda i: (0, 0)),      # b1: resident
                pl.BlockSpec((h_pad, o_pad), lambda i: (0, 0)),  # W2: resident
                pl.BlockSpec((1, o_pad), lambda i: (0, 0)),      # b2: resident
            ],
            out_specs=pl.BlockSpec((tb, o_pad), lambda i: (i, 0)),
        ),
        compiler_params=pltpu.CompilerParams(
            # Batch tiles are independent -> shard across both TCs on v7x.
            dimension_semantics=("parallel",),
        ),
    )(x, w1b, b1p, w2b, b2p)

    # Strip feature padding (batch is unpadded; Pallas masks the partial tile).
    return out_padded[:, :out_dim]


if __name__ == "__main__":
    # Small shapes consistent with the module's (input_dim, output_dim) contract.
    # batch=32 with block_batch=8 exercises a 4-step batch grid.
    batch, input_dim, hidden_dim, output_dim = 32, 16, 32, 1

    key = jax.random.PRNGKey(0)
    kx, k1, k2, k3, k4 = jax.random.split(key, 5)
    x = jax.random.normal(kx, (batch, input_dim), jnp.float32)
    s1 = 1.0 / jnp.sqrt(jnp.float32(input_dim))
    s2 = 1.0 / jnp.sqrt(jnp.float32(hidden_dim))
    w1 = jax.random.uniform(k1, (input_dim, hidden_dim), jnp.float32, -s1, s1)
    b1 = jax.random.uniform(k2, (hidden_dim,), jnp.float32, -s1, s1)   # 1-D, like nn.Linear
    w2 = jax.random.uniform(k3, (hidden_dim, output_dim), jnp.float32, -s2, s2)
    b2 = jax.random.uniform(k4, (output_dim,), jnp.float32, -s2, s2)   # 1-D, like nn.Linear

    params = prepare_params(w1, b1, w2, b2)          # one-time pad + bf16 cast
    logits = enhanced_ml_model_forward(x, *params, block_batch=8)
    jax.block_until_ready(logits)
    assert logits.shape == (batch, output_dim)
    assert logits.dtype == jnp.bfloat16

    lf = logits.astype(jnp.float32)

    # Reference with the same bf16 rounding pattern (f32 accumulation, bf16 store).
    xb = x.astype(jnp.bfloat16).astype(jnp.float32)
    w1f = w1.astype(jnp.bfloat16).astype(jnp.float32)
    w2f = w2.astype(jnp.bfloat16).astype(jnp.float32)
    h_ref = jnp.maximum(xb @ w1f + b1[None, :], 0.0).astype(jnp.bfloat16).astype(jnp.float32)
    ref_bf16 = (h_ref @ w2f + b2[None, :]).astype(jnp.bfloat16).astype(jnp.float32)
    assert jnp.allclose(lf, ref_bf16, atol=1e-2, rtol=1e-2), "mismatch vs bf16 reference"

    # Loose sanity check against the pure-f32 reference.
    ref_f32 = jnp.maximum(x @ w1 + b1[None, :], 0.0) @ w2 + b2[None, :]
    assert jnp.allclose(lf, ref_f32, atol=6e-2, rtol=6e-2), "mismatch vs f32 reference"

    print("KERNEL_OK")
</pallas_src>

<mosaic_0001>
module attributes {stable_mosaic.version = 11 : i64} {
  func.func @_mlp_kernel(%arg0: i32, %arg1: memref<8x16xf32, #tpu.memory_space<vmem>>, %arg2: memref<16x128xbf16, #tpu.memory_space<vmem>>, %arg3: memref<1x128xf32, #tpu.memory_space<vmem>>, %arg4: memref<128x128xbf16, #tpu.memory_space<vmem>>, %arg5: memref<1x128xf32, #tpu.memory_space<vmem>>, %arg6: memref<8x128xbf16, #tpu.memory_space<vmem>>) attributes {dimension_semantics = [#tpu.dimension_semantics<parallel>], iteration_bounds = array<i64: 4>, scalar_prefetch = 0 : i64, scratch_operands = 0 : i64, tpu.core_type = #tpu.core_type<tc>, window_params = [{transform_indices = @transform_0, window_bounds = array<i64: 8, 16>}, {pipeline_mode = #tpu.pipeline_mode<synchronous>, transform_indices = @transform_1, window_bounds = array<i64: 16, 128>}, {pipeline_mode = #tpu.pipeline_mode<synchronous>, transform_indices = @transform_2, window_bounds = array<i64: 1, 128>}, {pipeline_mode = #tpu.pipeline_mode<synchronous>, transform_indices = @transform_3, window_bounds = array<i64: 128, 128>}, {pipeline_mode = #tpu.pipeline_mode<synchronous>, transform_indices = @transform_4, window_bounds = array<i64: 1, 128>}, {transform_indices = @transform_5, window_bounds = array<i64: 8, 128>}]} {
    %c0 = arith.constant 0 : index
    %c0_0 = arith.constant 0 : index
    %0 = vector.load %arg1[%c0, %c0_0] : memref<8x16xf32, #tpu.memory_space<vmem>>, vector<8x16xf32>
    %1 = arith.truncf %0 : vector<8x16xf32> to vector<8x16xbf16>
    %c0_1 = arith.constant 0 : index
    %c0_2 = arith.constant 0 : index
    %2 = vector.load %arg2[%c0_1, %c0_2] : memref<16x128xbf16, #tpu.memory_space<vmem>>, vector<16x128xbf16>
    %cst = arith.constant dense<0.000000e+00> : vector<8x128xf32>
    %3 = tpu.matmul %1, %2, %cst {dimension_numbers = #tpu.dot_dimension_numbers<[1], [0], [0], [1], [0, 0, 1, 1], [], []>} : vector<8x16xbf16>, vector<16x128xbf16>, vector<8x128xf32> -> vector<8x128xf32>
    %c0_3 = arith.constant 0 : index
    %c0_4 = arith.constant 0 : index
    %4 = vector.load %arg3[%c0_3, %c0_4] : memref<1x128xf32, #tpu.memory_space<vmem>>, vector<1x128xf32>
    %5 = vector.broadcast %4 : vector<1x128xf32> to vector<8x128xf32>
    %6 = arith.addf %3, %5 : vector<8x128xf32>
    %cst_5 = arith.constant 0.000000e+00 : f32
    %7 = vector.broadcast %cst_5 : f32 to vector<8x128xf32>
    %8 = arith.maximumf %6, %7 : vector<8x128xf32>
    %9 = arith.truncf %8 : vector<8x128xf32> to vector<8x128xbf16>
    %c0_6 = arith.constant 0 : index
    %c0_7 = arith.constant 0 : index
    %10 = vector.load %arg4[%c0_6, %c0_7] : memref<128x128xbf16, #tpu.memory_space<vmem>>, vector<128x128xbf16>
    %cst_8 = arith.constant dense<0.000000e+00> : vector<8x128xf32>
    %11 = tpu.matmul %9, %10, %cst_8 {dimension_numbers = #tpu.dot_dimension_numbers<[1], [0], [0], [1], [0, 0, 1, 1], [], []>} : vector<8x128xbf16>, vector<128x128xbf16>, vector<8x128xf32> -> vector<8x128xf32>
    %c0_9 = arith.constant 0 : index
    %c0_10 = arith.constant 0 : index
    %12 = vector.load %arg5[%c0_9, %c0_10] : memref<1x128xf32, #tpu.memory_space<vmem>>, vector<1x128xf32>
    %13 = vector.broadcast %12 : vector<1x128xf32> to vector<8x128xf32>
    %14 = arith.addf %11, %13 : vector<8x128xf32>
    %15 = arith.truncf %14 : vector<8x128xf32> to vector<8x128xbf16>
    %c0_11 = arith.constant 0 : index
    %c0_12 = arith.constant 0 : index
    %16 = vector.load %arg6[%c0_11, %c0_12] : memref<8x128xbf16, #tpu.memory_space<vmem>>, vector<8x128xbf16>
    tpu.vector_store %arg6[%c0_11, %c0_12], %15 {strides = array<i32>} : memref<8x128xbf16, #tpu.memory_space<vmem>>, vector<8x128xbf16>,
    return
  }
  func.func @transform_0(%arg0: i32) -> (i32, i32) {
    %c0_i32 = arith.constant 0 : i32
    %c0_i32_0 = arith.constant 0 : i32
    return %arg0, %c0_i32 : i32, i32
  }
  func.func @transform_1(%arg0: i32) -> (i32, i32) {
    %c0_i32 = arith.constant 0 : i32
    %c0_i32_0 = arith.constant 0 : i32
    %c0_i32_1 = arith.constant 0 : i32
    return %c0_i32, %c0_i32_0 : i32, i32
  }
  func.func @transform_2(%arg0: i32) -> (i32, i32) {
    %c0_i32 = arith.constant 0 : i32
    %c0_i32_0 = arith.constant 0 : i32
    %c0_i32_1 = arith.constant 0 : i32
    return %c0_i32, %c0_i32_0 : i32, i32
  }
  func.func @transform_3(%arg0: i32) -> (i32, i32) {
    %c0_i32 = arith.constant 0 : i32
    %c0_i32_0 = arith.constant 0 : i32
    %c0_i32_1 = arith.constant 0 : i32
    return %c0_i32, %c0_i32_0 : i32, i32
  }
  func.func @transform_4(%arg0: i32) -> (i32, i32) {
    %c0_i32 = arith.constant 0 : i32
    %c0_i32_0 = arith.constant 0 : i32
    %c0_i32_1 = arith.constant 0 : i32
    return %c0_i32, %c0_i32_0 : i32, i32
  }
  func.func @transform_5(%arg0: i32) -> (i32, i32) {
    %c0_i32 = arith.constant 0 : i32
    %c0_i32_0 = arith.constant 0 : i32
    return %arg0, %c0_i32 : i32, i32
  }
}

</mosaic_0001>

<bundles_post_ra>
// kernel: enhanced_ml_model_forward.1
= control target key start
LH: loop header
LB: loop body
LE: loop exit
PB: predicated region body
PF: predicated region fallthrough
CT: control target
= control target key end

     0   :  { %10 = vsyncpa [#allocation3], 0  ;;  %s642_s18 = smov 0   ;;  %s694_s0 = inlined_call_operand.vmem [shape: f32[32,16], index: 0, kind: input, shape index: {}]   ;;  %s695_s1 = inlined_call_operand.vmem [shape: bf16[16,128], index: 1, kind: input, shape index: {}]   ;;  %s696_s2 = inlined_call_operand.vmem [shape: f32[1,128], index: 2, kind: input, shape index: {}]   ;;  %s697_s3 = inlined_call_operand.hbm [shape: bf16[128,128], index: 3, kind: input, shape index: {}]   ;;  %s698_s4 = inlined_call_operand.vmem [shape: f32[1,128], index: 4, kind: input, shape index: {}]   ;;  %s699_s5 = inlined_call_operand.vmem [shape: bf16[32,128], index: 5, kind: output, shape index: {}]  }
   0x1 LB: > { %s648_s19 = sadd.s32 4294967295, %s605_s18   ;;  %p479_p0 = scmp.ge.s32.totalorder %s605_s18, 1  ;;  %s605_s18 = sphi %s642_s18, %s16_s18  }
   0x2   : > { %p157_p1 = scmp.lt.s32.totalorder %s605_s18, 5  ;;  %s607_s20 = smov [#allocation2]  }
   0x3   : > { %s175_s21 = sshll.u32 %s607_s20, 4  ;;  %p545_p3 = scmp.eq.s32.totalorder %s648_s19, 0  ;;  %s176_s21 = int_to_ptr.vmem [resolvable:$true] %s175_s21 }
   0x4   : > { %p652_p2 = pnand %p479_p0, %p157_p1  ;;  %s580_s23 = scalar_lea.vmem %s176_s21, 1024 }
   0x5   : > { %p581_p7 = scmp.ne.s32.totalorder %s176_s21, %s580_s23  ;;  %p588_p10 = scmp.lt.s32.totalorder %s176_s21, %s176_s21 }
   0x6   : > { %p541_p4 = pneg %p652_p2  ;;  %p589_p11 = scmp.lt.s32.totalorder %s580_s23, %s580_s23 }
   0x8   : > { %p542_p5 = pnand %p545_p3, %p541_p4  ;;  %p590_p12 = por %p589_p11, %p588_p10 }
   0xa   : > { %p571_p6 = pneg %p542_p5 }
   0xc   : > { %p583_p8 = pnand %p581_p7, %p571_p6 }
   0xe   : > { %p584_p9 = pneg %p583_p8 }
  0x10   : > { %p591_p13 = pnand %p590_p12, %p584_p9 }
  0x12   : > { %594 = shalt.err (!%p591_p13)
}
  0x13   : > { %s608_s24 = smov 64   ;;  %s609_s25 = smov 4  }
  0x14   : > { %544 = dma.hbm_to_vmem [thread:$0]  (!%p542_p5), %s697_s3, 1024, %s176_s21, [#allocation3], %s608_s24, %s608_s24, %s609_s25  }
  0x15   : > { %201 = sbr.rel (%p652_p2) target bundleno = 433 (0x1b1), region = 40 }
  0x1a   : > { %600 = dma.done.wait (%p545_p3), [#allocation3], 1024  }
  0x1b   : > { %602 = vsyncadd (%p545_p3), [#allocation3], 4294966272  ;;  %p227_p0 = scmp.lt.s32.totalorder %s648_s19, 3  ;;  %v610_v0 = vmov 0.0   ;;  %vm611_vm0 = vmmov 0   ;;  %v560_v1 = vld [vmem:[%s695_s1] sm:$0xff]  }
  0x1c   : > { %511 = vmatprep.subr.bf16.mxu0 %v610_v0  ;;  %513 = vmatprep.mubr.msk.bf16.mxu0 %vm611_vm0, %v610_v0  ;;  %vm253_vm1 = vcmask 130048   ;;  %v561_v4 = vld [vmem:[#allocation2 + $0x38] sm:$0xff]   ;;  %v562_v5 = vld [vmem:[#allocation2 + $0x30] sm:$0xff]   ;;  %v563_v6 = vld [vmem:[#allocation2 + $0x28] sm:$0xff]  }
  0x1d   : > { %s702_s19 = smov (!%p227_p0, %s648_s19), 3  ;;  %517 = vmatprep.subr.bf16.mxu1 %v610_v0  ;;  %533 = vmatprep.mubr.msk.bf16.mxu1 %vm611_vm0, %v610_v0  ;;  %v564_v7 = vld [vmem:[#allocation2 + $0x20] sm:$0xff]   ;;  %v565_v8 = vld [vmem:[#allocation2 + $0x18] sm:$0xff]   ;;  %v566_v9 = vld [vmem:[#allocation2 + $0x10] sm:$0xff]  }
  0x1e   : > { %s484_s28 = sshll.u32 %s702_s19, 3  ;;  %512 = vmatpush3.bf16.msra.mxu0 %v560_v1  ;;  %518 = vmatpush3.bf16.msra.mxu1 %v561_v4  ;;  %v567_v10 = vld [vmem:[#allocation2 + $0x8] sm:$0xff]   ;;  %v568_v11 = vld [vmem:[#allocation2] sm:$0xff]   ;;  %s485_s13 = sshll.u32 %s702_s19, 2 }
  0x1f   : > { %s230_s6 = scalar_lea.vmem %s694_s0, %s484_s28  ;;  %519 = vmatprep.subr.bf16.mxu1 %v610_v0  ;;  %v486_v12 = vld [vmem:[%s696_s2] ss:$0 sm:$0xff]  ;;  %s234_s16 = scalar_lea.vmem %s699_s5, %s485_s13 }
  0x20   : > { %v236_v2 = vld [vmem:[%s230_s6] sm:$0xff] }
  0x21   : > { %v237_v3 = vpack.c.bf16 %v236_v2, %v236_v2  ;;  %v489_v20 = vld [vmem:[%s698_s4] ss:$0 sm:$0xff] }
  0x22   : > { %520 = vmatpush3.bf16.msra.mxu1 %v562_v5 }
  0x23   : > { %514 = vmatmul.mubr.msk.bf16.vlgmr.msra.gmra.mxu0 %vm253_vm1, %v237_v3  ;;  %521 = vmatprep.subr.bf16.mxu1 %v610_v0 }
  0x26   : > { %522 = vmatpush3.bf16.msra.mxu1 %v563_v6 }
  0x27   : > { %523 = vmatprep.subr.bf16.mxu1 %v610_v0 }
  0x2a   : > { %524 = vmatpush3.bf16.msra.mxu1 %v564_v7 }
  0x2b   : > { %525 = vmatprep.subr.bf16.mxu1 %v610_v0 }
  0x2e   : > { %526 = vmatpush3.bf16.msra.mxu1 %v565_v8 }
  0x2f   : > { %527 = vmatprep.subr.bf16.mxu1 %v610_v0 }
  0x32   : > { %528 = vmatpush3.bf16.msra.mxu1 %v566_v9 }
  0x33   : > { %529 = vmatprep.subr.bf16.mxu1 %v610_v0 }
  0x36   : > { %530 = vmatpush3.bf16.msra.mxu1 %v567_v10 }
  0x37   : > { %531 = vmatprep.subr.bf16.mxu1 %v610_v0 }
  0x3a   : > { %532 = vmatpush3.bf16.msra.mxu1 %v568_v11 }
  0xe3   : > { %v291_v13 = vpop.f32.mrf.mxu0 }
  0xe4   : > { %v292_v14 = vadd.f32 %v486_v12, %v291_v13 }
  0xe5   : > { %v515_v15 = vpop.f32.mrf.mxu0 }
  0xe6   : > { %v297_v16 = vmax.f32 %v292_v14, 0.0 }
  0xe7   : > { %v294_v17 = vpop.f32.mrf.mxu0 }
  0xe8   : > { %v298_v18 = vpack.c.bf16 %v297_v16, %v297_v16 }
  0xe9   : > { %v516_v19 = vpop.f32.mrf.mxu0 }
  0xea   : > { %534 = vmatmul.mubr.bf16.vlgmr.msra.gmra.mxu1 %v298_v18 }
 0x1aa   : > { %v404_v21 = vpop.f32.mrf.mxu1 }
 0x1ab   : > { %v405_v22 = vadd.f32 %v489_v20, %v404_v21 }
 0x1ac   : > { %v535_v23 = vpop.f32.mrf.mxu1 }
 0x1ad   : > { %v410_v24 = vpack.c.bf16 %v405_v22, %v405_v22 }
 0x1ae   : > { %v407_v25 = vpop.f32.mrf.mxu1 }
 0x1af   : > { %411 = vst [vmem:[%s234_s16] sm:$0xf] %v410_v24 }
 0x1b0   : > { %v536_v26 = vpop.f32.mrf.mxu1 }
 0x1b1 PF: > { %s16_s18 = sadd.s32 1, %s605_s18  }
 0x1b2   : > { %p13_p1 = scmp.ge.s32.totalorder %s16_s18, 6  }
 0x1b4   :  { %15 = sbr.rel (!%p13_p1) target bundleno = 1 (0x1), region = 75 }
 0x1b9   :  { %431 = vsyncpa [#allocation3], 1 }
 0x1ba   :  { %433 = vsyncpa [#allocation3 + $0x1], 1 }

</bundles_post_ra>
